<compile_context>
chip_gen: v7x
topology: tpu7x:2x2x1
jax: 0.10.0
libtpu: 0.0.40
codegen_flags: <defaults>
</compile_context>

<pallas_src>
import functools
import math

import jax
import jax.numpy as jnp
from jax.experimental import pallas as pl
from jax.experimental.pallas import tpu as pltpu


def _round_up(x, m):
    return ((x + m - 1) // m) * m


def _sublane_multiple(dtype):
    # Minimum second-to-last tile multiple per element width.
    return {4: 8, 2: 16, 1: 32}.get(jnp.dtype(dtype).itemsize, 8)


def _linear_kernel_bias(x_ref, w_ref, b_ref, o_ref, acc_ref):
    # x_ref: (tm, tk); w_ref: (tk, tn); b_ref: (1, tn) f32; o_ref: (tm, tn)
    k = pl.program_id(2)

    @pl.when(k == 0)
    def _():
        acc_ref[...] = jnp.zeros_like(acc_ref)

    # Plain NN contraction: weight already stored as (K, N) = W^T.
    acc_ref[...] += jnp.dot(x_ref[...], w_ref[...],
                            preferred_element_type=jnp.float32)

    @pl.when(k == pl.num_programs(2) - 1)
    def _():
        o_ref[...] = (acc_ref[...] + b_ref[...]).astype(o_ref.dtype)


def _linear_kernel_nobias(x_ref, w_ref, o_ref, acc_ref):
    k = pl.program_id(2)

    @pl.when(k == 0)
    def _():
        acc_ref[...] = jnp.zeros_like(acc_ref)

    acc_ref[...] += jnp.dot(x_ref[...], w_ref[...],
                            preferred_element_type=jnp.float32)

    @pl.when(k == pl.num_programs(2) - 1)
    def _():
        o_ref[...] = acc_ref[...].astype(o_ref.dtype)


@functools.partial(
    jax.jit, static_argnames=("use_bias", "force_pallas", "compute_dtype"))
def linear_forward(x, weight_t, bias=None, *, use_bias=True,
                   force_pallas=False, compute_dtype=None):
    """Linear layer forward.

    x:        (..., in_features)
    weight_t: (in_features, out_features)  -- W^T, i.e. the PyTorch weight
              (out_features, in_features) transposed once at init.
    bias:     (out_features,) float32, or None.

    Returns x @ weight_t + bias  ==  x @ W^T + b  (nn.Linear semantics).
    """
    K, N = weight_t.shape
    lead = x.shape[:-1]
    M = math.prod(lead) if lead else 1
    out_dtype = x.dtype

    if compute_dtype is not None:
        x = x.astype(compute_dtype)
        weight_t = weight_t.astype(compute_dtype)

    # Small-problem fast path: below this size the pad/launch overhead dwarfs
    # the matmul and XLA's fused dot is strictly faster.
    if not force_pallas and (2 * M * N * K < 10_000_000 or M < 2 or K < 8):
        y = jnp.dot(x.reshape(M, K), weight_t,
                    preferred_element_type=jnp.float32)
        if use_bias:
            y = y + bias.astype(jnp.float32)
        return y.astype(out_dtype).reshape(*lead, N)

    x2d = x.reshape(M, K)
    sub = _sublane_multiple(x2d.dtype)

    # Tile sizes: large (better HBM reuse / fewer accumulator passes) but small
    # enough that double-buffered inputs + output + f32 acc stay well under the
    # v7x 64 MiB physical VMEM.
    tm = min(512, _round_up(M, sub))
    tn = N if N <= 512 else 512                 # full dim, or a 128-multiple
    if K <= 1024:
        tk, Kp = K, K                           # full-dim block: no K padding
    else:
        tk = 512
        Kp = _round_up(K, tk)

    # Only K needs zero padding (garbage there would corrupt the reduction);
    # partial M/N boundary blocks are handled by pl.cdiv + masked output writes.
    if Kp != K:
        x2d = jnp.pad(x2d, ((0, 0), (0, Kp - K)))
        weight_t = jnp.pad(weight_t, ((0, Kp - K), (0, 0)))

    grid = (pl.cdiv(M, tm), pl.cdiv(N, tn), Kp // tk)

    x_spec = pl.BlockSpec((tm, tk), lambda i, j, k: (i, k))
    w_spec = pl.BlockSpec((tk, tn), lambda i, j, k: (k, j))
    o_spec = pl.BlockSpec((tm, tn), lambda i, j, k: (i, j))
    out_shape = jax.ShapeDtypeStruct((M, N), out_dtype)

    in_itemsize = jnp.dtype(x2d.dtype).itemsize
    out_itemsize = jnp.dtype(out_dtype).itemsize
    # double-buffered inputs + double-buffered output + f32 accumulator + bias
    vmem_est = (2 * (tm * tk + tk * tn) * in_itemsize
                + 2 * tm * tn * out_itemsize
                + tm * tn * 4
                + 2 * tn * 4)
    vmem_limit = int(min(40 * 1024 * 1024,
                         max(int(1.5 * vmem_est), 16 * 1024 * 1024)))

    compiler_params = pltpu.CompilerParams(
        dimension_semantics=("parallel", "parallel", "arbitrary"),
        vmem_limit_bytes=vmem_limit)

    cost = pl.CostEstimate(
        flops=2 * M * N * Kp,
        transcendentals=0,
        bytes_accessed=((M * Kp + Kp * N) * in_itemsize
                        + M * N * out_itemsize
                        + (N * 4 if use_bias else 0)))

    if use_bias:
        b2d = bias.astype(jnp.float32).reshape(1, N)
        b_spec = pl.BlockSpec((1, tn), lambda i, j, k: (0, j))
        out2d = pl.pallas_call(
            _linear_kernel_bias,
            grid_spec=pltpu.PrefetchScalarGridSpec(
                num_scalar_prefetch=0,
                grid=grid,
                in_specs=[x_spec, w_spec, b_spec],
                out_specs=o_spec,
                scratch_shapes=[pltpu.VMEM((tm, tn), jnp.float32)]),
            out_shape=out_shape,
            compiler_params=compiler_params,
            cost_estimate=cost,
        )(x2d, weight_t, b2d)
    else:
        out2d = pl.pallas_call(
            _linear_kernel_nobias,
            grid_spec=pltpu.PrefetchScalarGridSpec(
                num_scalar_prefetch=0,
                grid=grid,
                in_specs=[x_spec, w_spec],
                out_specs=o_spec,
                scratch_shapes=[pltpu.VMEM((tm, tn), jnp.float32)]),
            out_shape=out_shape,
            compiler_params=compiler_params,
            cost_estimate=cost,
        )(x2d, weight_t)

    return out2d.reshape(*lead, N)


def init_linear_params(key, in_features, out_features, bias=True,
                       dtype=jnp.float32):
    """Matches the module: xavier_normal weight, nn.Linear default bias.

    Returns (weight_t, bias) with weight_t = W^T of shape (in, out): the
    transpose happens ONCE here, outside the forward hot path.
    """
    wkey, bkey = jax.random.split(key)
    # Xavier / Glorot normal: std = sqrt(2 / (fan_in + fan_out)), gain = 1.
    std = (2.0 / (in_features + out_features)) ** 0.5
    weight = std * jax.random.normal(
        wkey, (out_features, in_features), dtype=dtype)
    weight_t = weight.T  # (K, N), one-time layout change
    if bias:
        # nn.Linear default bias init: U(-1/sqrt(fan_in), 1/sqrt(fan_in)).
        bound = 1.0 / (in_features ** 0.5)
        b = jax.random.uniform(bkey, (out_features,), dtype=jnp.float32,
                               minval=-bound, maxval=bound)
    else:
        b = None
    return weight_t, b


if __name__ == "__main__":
    key = jax.random.PRNGKey(0)
    k_x, k_p = jax.random.split(key)

    batch, seq, in_features, out_features = 2, 8, 32, 64
    x = jax.random.normal(k_x, (batch, seq, in_features), dtype=jnp.float32)
    weight_t, bias = init_linear_params(k_p, in_features, out_features, bias=True)

    ref = x @ weight_t + bias
    ref_nb = x @ weight_t

    # Pallas kernel path (forced: this demo shape is below the XLA-fallback
    # threshold, but we want to exercise the kernel itself).
    out = linear_forward(x, weight_t, bias, use_bias=True, force_pallas=True)
    out = jax.block_until_ready(out)
    assert out.shape == (batch, seq, out_features)
    assert jnp.allclose(out, ref, atol=1e-4, rtol=1e-4), \
        float(jnp.max(jnp.abs(out - ref)))

    # No-bias Pallas path.
    out_nb = linear_forward(x, weight_t, None, use_bias=False, force_pallas=True)
    out_nb = jax.block_until_ready(out_nb)
    assert jnp.allclose(out_nb, ref_nb, atol=1e-4, rtol=1e-4)

    # Default call (small-problem XLA fast path) must agree too.
    out_fb = linear_forward(x, weight_t, bias, use_bias=True)
    out_fb = jax.block_until_ready(out_fb)
    assert jnp.allclose(out_fb, ref, atol=1e-4, rtol=1e-4)

    print("KERNEL_OK")
</pallas_src>

<mosaic_0001>
module attributes {stable_mosaic.version = 11 : i64} {
  func.func @_linear_kernel_bias(%arg0: i32, %arg1: i32, %arg2: i32, %arg3: memref<16x32xf32, #tpu.memory_space<vmem>>, %arg4: memref<32x64xf32, #tpu.memory_space<vmem>>, %arg5: memref<1x64xf32, #tpu.memory_space<vmem>>, %arg6: memref<16x64xf32, #tpu.memory_space<vmem>>, %arg7: memref<16x64xf32, #tpu.memory_space<vmem>>) attributes {dimension_semantics = [#tpu.dimension_semantics<parallel>, #tpu.dimension_semantics<parallel>, #tpu.dimension_semantics<arbitrary>], iteration_bounds = array<i64: 1, 1, 1>, scalar_prefetch = 0 : i64, scratch_operands = 1 : i64, tpu.core_type = #tpu.core_type<tc>, window_params = [{transform_indices = @transform_0, window_bounds = array<i64: 16, 32>}, {transform_indices = @transform_1, window_bounds = array<i64: 32, 64>}, {transform_indices = @transform_2, window_bounds = array<i64: 1, 64>}, {transform_indices = @transform_3, window_bounds = array<i64: 16, 64>}]} {
    %c0_i32 = arith.constant 0 : i32
    %0 = arith.cmpi eq, %arg2, %c0_i32 : i32
    %1 = arith.extui %0 : i1 to i32
    %c0_i32_0 = arith.constant 0 : i32
    %2 = arith.cmpi ne, %1, %c0_i32_0 : i32
    scf.if %2 {
      %cst_10 = arith.constant 0.000000e+00 : f32
      %12 = vector.broadcast %cst_10 : f32 to vector<16x64xf32>
      %c0_11 = arith.constant 0 : index
      %c0_12 = arith.constant 0 : index
      %13 = vector.load %arg7[%c0_11, %c0_12] : memref<16x64xf32, #tpu.memory_space<vmem>>, vector<16x64xf32>
      tpu.vector_store %arg7[%c0_11, %c0_12], %12 {strides = array<i32>} : memref<16x64xf32, #tpu.memory_space<vmem>>, vector<16x64xf32>,
    } else {
    }
    %c0 = arith.constant 0 : index
    %c0_1 = arith.constant 0 : index
    %3 = vector.load %arg7[%c0, %c0_1] : memref<16x64xf32, #tpu.memory_space<vmem>>, vector<16x64xf32>
    %c0_2 = arith.constant 0 : index
    %c0_3 = arith.constant 0 : index
    %4 = vector.load %arg3[%c0_2, %c0_3] : memref<16x32xf32, #tpu.memory_space<vmem>>, vector<16x32xf32>
    %c0_4 = arith.constant 0 : index
    %c0_5 = arith.constant 0 : index
    %5 = vector.load %arg4[%c0_4, %c0_5] : memref<32x64xf32, #tpu.memory_space<vmem>>, vector<32x64xf32>
    %cst = arith.constant dense<0.000000e+00> : vector<16x64xf32>
    %6 = tpu.matmul %4, %5, %cst {dimension_numbers = #tpu.dot_dimension_numbers<[1], [0], [0], [1], [0, 0, 1, 1], [], []>} : vector<16x32xf32>, vector<32x64xf32>, vector<16x64xf32> -> vector<16x64xf32>
    %7 = arith.addf %3, %6 : vector<16x64xf32>
    %c0_6 = arith.constant 0 : index
    %c0_7 = arith.constant 0 : index
    %8 = vector.load %arg7[%c0_6, %c0_7] : memref<16x64xf32, #tpu.memory_space<vmem>>, vector<16x64xf32>
    tpu.vector_store %arg7[%c0_6, %c0_7], %7 {strides = array<i32>} : memref<16x64xf32, #tpu.memory_space<vmem>>, vector<16x64xf32>,
    %c0_i32_8 = arith.constant 0 : i32
    %9 = arith.cmpi eq, %arg2, %c0_i32_8 : i32
    %10 = arith.extui %9 : i1 to i32
    %c0_i32_9 = arith.constant 0 : i32
    %11 = arith.cmpi ne, %10, %c0_i32_9 : i32
    scf.if %11 {
      %c0_10 = arith.constant 0 : index
      %c0_11 = arith.constant 0 : index
      %12 = vector.load %arg7[%c0_10, %c0_11] : memref<16x64xf32, #tpu.memory_space<vmem>>, vector<16x64xf32>
      %c0_12 = arith.constant 0 : index
      %c0_13 = arith.constant 0 : index
      %13 = vector.load %arg5[%c0_12, %c0_13] : memref<1x64xf32, #tpu.memory_space<vmem>>, vector<1x64xf32>
      %14 = vector.broadcast %13 : vector<1x64xf32> to vector<16x64xf32>
      %15 = arith.addf %12, %14 : vector<16x64xf32>
      %c0_14 = arith.constant 0 : index
      %c0_15 = arith.constant 0 : index
      %16 = vector.load %arg6[%c0_14, %c0_15] : memref<16x64xf32, #tpu.memory_space<vmem>>, vector<16x64xf32>
      tpu.vector_store %arg6[%c0_14, %c0_15], %15 {strides = array<i32>} : memref<16x64xf32, #tpu.memory_space<vmem>>, vector<16x64xf32>,
    } else {
    }
    return
  }
  func.func @transform_0(%arg0: i32, %arg1: i32, %arg2: i32) -> (i32, i32) {
    %c0_i32 = arith.constant 0 : i32
    return %arg0, %arg2 : i32, i32
  }
  func.func @transform_1(%arg0: i32, %arg1: i32, %arg2: i32) -> (i32, i32) {
    %c0_i32 = arith.constant 0 : i32
    return %arg2, %arg1 : i32, i32
  }
  func.func @transform_2(%arg0: i32, %arg1: i32, %arg2: i32) -> (i32, i32) {
    %c0_i32 = arith.constant 0 : i32
    %c0_i32_0 = arith.constant 0 : i32
    return %c0_i32, %arg1 : i32, i32
  }
  func.func @transform_3(%arg0: i32, %arg1: i32, %arg2: i32) -> (i32, i32) {
    %c0_i32 = arith.constant 0 : i32
    return %arg0, %arg1 : i32, i32
  }
}

</mosaic_0001>

<bundles_post_ra>
// kernel: linear_forward.1
= control target key start
LH: loop header
LB: loop body
LE: loop exit
PB: predicated region body
PF: predicated region fallthrough
CT: control target
= control target key end

     0   :  { %8 = vsyncpa [#allocation4], 0  ;;  %s365_s0 = inlined_call_operand.hbm [shape: f32[16,32], index: 0, kind: input, shape index: {}]   ;;  %s366_s1 = inlined_call_operand.hbm [shape: f32[32,64], index: 1, kind: input, shape index: {}]   ;;  %s367_s2 = inlined_call_operand.vmem [shape: f32[1,64], index: 2, kind: input, shape index: {}]   ;;  %s368_s3 = inlined_call_operand.hbm [shape: f32[16,64], index: 3, kind: output, shape index: {}]  }
   0x1   :  { %9 = vsyncpa [#allocation7], 0 }
   0x2   :  { %10 = vsyncpa [#allocation5], 0  ;;  %s285_s12 = smov [#allocation3]   ;;  %s213_s16 = scalar_lea.hbm %s365_s0, 256 }
   0x3   :  { %s16_s13 = sshll.u32 %s285_s12, 4  ;;  %p214_p0 = scmp.ne.s32.totalorder %s365_s0, %s213_s16  ;;  %s17_s13 = int_to_ptr.vmem [resolvable:$true] %s16_s13 }
   0x4   :  { %p217_p1 = scmp.lt.u32.totalorder %s213_s16, %s365_s0 }
   0x6   :  { %p219_p2 = pnand %p217_p1, %p214_p0 }
   0x8   :  { %222 = shalt.err (!%p219_p2)
}
   0x9   :  { %s223_s21 = scalar_lea.vmem %s17_s13, 256  ;;  %p228_p4 = scmp.lt.s32.totalorder %s17_s13, %s17_s13 }
   0xa   :  { %p224_p3 = scmp.ne.s32.totalorder %s17_s13, %s223_s21  ;;  %p229_p5 = scmp.lt.s32.totalorder %s223_s21, %s223_s21 }
   0xc   :  { %p230_p6 = por %p229_p5, %p228_p4 }
   0xe   :  { %p231_p7 = pnand %p230_p6, %p224_p3 }
  0x10   :  { %234 = shalt.err (!%p231_p7)
}
  0x11   :  { %s286_s22 = smov 128   ;;  %s287_s23 = smov 8  }
  0x12   :  { %22 = dma.hbm_to_vmem [thread:$0]  %s365_s0, 256, %s17_s13, [#allocation4], %s286_s22, %s286_s22, %s287_s23  }
  0x13   :  { %s288_s26 = smov [#allocation6]   ;;  %s235_s30 = scalar_lea.hbm %s366_s1, 512 }
  0x14   :  { %s28_s27 = sshll.u32 %s288_s26, 4  ;;  %p236_p8 = scmp.ne.s32.totalorder %s366_s1, %s235_s30  ;;  %s29_s27 = int_to_ptr.vmem [resolvable:$true] %s28_s27 }
  0x15   :  { %p239_p9 = scmp.lt.u32.totalorder %s235_s30, %s366_s1 }
  0x17   :  { %p241_p10 = pnand %p239_p9, %p236_p8 }
  0x19   :  { %244 = shalt.err (!%p241_p10)
}
  0x1a   :  { %s245_s8 = scalar_lea.vmem %s29_s27, 512  ;;  %p250_p12 = scmp.lt.s32.totalorder %s29_s27, %s29_s27 }
  0x1b   :  { %p246_p11 = scmp.ne.s32.totalorder %s29_s27, %s245_s8  ;;  %p251_p13 = scmp.lt.s32.totalorder %s245_s8, %s245_s8 }
  0x1d   :  { %p252_p0 = por %p251_p13, %p250_p12 }
  0x1f   :  { %p253_p1 = pnand %p252_p0, %p246_p11 }
  0x21   :  { %256 = shalt.err (!%p253_p1)
}
  0x22   :  { %34 = dma.hbm_to_vmem [thread:$0]  %s366_s1, 512, %s29_s27, [#allocation7], %s286_s22, %s286_s22, %s287_s23  }
  0x23   :  { %279 = dma.done.wait [#allocation4], 256  }
  0x24   :  { %280 = vsyncadd [#allocation4], 4294967040 }
  0x25   :  { %281 = dma.done.wait [#allocation7], 512  }
  0x26   :  { %282 = vsyncadd [#allocation7], 4294966784  ;;  %vm47_vm0 = vcmask 523264   ;;  %v289_v0 = vmov 0.0   ;;  %vm58_vm1 = vcmask 261120   ;;  %v54_v1 = vld [vmem:[#allocation6] sm:$0xff] }
  0x27   :  { %49 = vst.msk [vmem:[#allocation2 + $0x8] sm:$0xff] %vm47_vm0, %v289_v0  ;;  %48 = vst.msk [vmem:[#allocation2] sm:$0xff] %vm47_vm0, %v289_v0  ;;  %v55_v2 = vld [vmem:[#allocation6 + $0x8] sm:$0xff]  ;;  %v56_v3 = vld [vmem:[#allocation6 + $0x10] sm:$0xff]  ;;  %s290_s11 = smov [#allocation8]  }
  0x28   :  { %v199_v4 = vpack.c.bf16 %v55_v2, %v54_v1  ;;  %v57_v5 = vld [vmem:[#allocation6 + $0x18] sm:$0xff]  ;;  %v52_v6 = vld [vmem:[#allocation3] sm:$0xff]  ;;  %v181_v15 = vld [vmem:[%s367_s2] ss:$0 sm:$0xff]  ;;  %s166_s12 = sshll.u32 %s290_s11, 4  ;;  %s167_s12 = int_to_ptr.vmem [resolvable:$true] %s166_s12 }
  0x29   :  { %v203_v7 = vpack.c.bf16 %v57_v5, %v56_v3  ;;  %196 = vmatprep.mubr.msk.f32.mxu0 %vm58_vm1, %v52_v6  ;;  %v53_v8 = vld [vmem:[#allocation3 + $0x8] sm:$0xff]  ;;  %s257_s13 = scalar_lea.vmem %s167_s12, 256  ;;  %p262_p3 = scmp.lt.s32.totalorder %s167_s12, %s167_s12 }
  0x2a   :  { %200 = vmatprep.subr.bf16.mxu0 %v199_v4  ;;  %p258_p2 = scmp.ne.s32.totalorder %s167_s12, %s257_s13  ;;  %p263_p4 = scmp.lt.s32.totalorder %s257_s13, %s257_s13 }
  0x2b   :  { %202 = vmatpush3.bf16.msra.mxu0 %v199_v4 }
  0x2c   :  { %204 = vmatprep.subr.bf16.mxu0 %v203_v7  ;;  %p264_p5 = por %p263_p4, %p262_p3 }
  0x2e   :  { %v51_v9 = vld [vmem:[#allocation2 + $0x8] sm:$0xff]  ;;  %v50_v10 = vld [vmem:[#allocation2] sm:$0xff]  ;;  %p265_p6 = pnand %p264_p5, %p258_p2 }
  0x2f   :  { %206 = vmatpush3.bf16.msra.mxu0 %v203_v7 }
  0x32   :  { %197 = vmatmul.mubr.msk.f32.vlgmr.msra.gmra.mrb[0].mxu0 %vm58_vm1, %v53_v8 }
 0x105   :  { %v198_v11 = vpop.f32.mrb[0].mxu0 }
 0x106   :  { %v141_v12 = vadd.f32 %v198_v11, %v51_v9  ;;  %v131_v13 = vpop.f32.mrb[1].mxu0 }
 0x107   :  { %v140_v14 = vadd.f32 %v131_v13, %v50_v10 }
 0x108   :  { %144 = vst.msk [vmem:[#allocation2 + $0x8] sm:$0xff] %vm47_vm0, %v141_v12 }
 0x109   :  { %143 = vst.msk [vmem:[#allocation2] sm:$0xff] %vm47_vm0, %v140_v14 }
 0x10f   :  { %v149_v16 = vld [vmem:[#allocation2 + $0x8] sm:$0xff] }
 0x110   :  { %v148_v17 = vld [vmem:[#allocation2] sm:$0xff]  ;;  %v158_v18 = vadd.f32 %v181_v15, %v149_v16 }
 0x111   :  { %v157_v19 = vadd.f32 %v181_v15, %v148_v17 }
 0x112   :  { %160 = vst.msk [vmem:[#allocation8 + $0x8] sm:$0xff] %vm47_vm0, %v158_v18 }
 0x113   :  { %159 = vst.msk [vmem:[#allocation8] sm:$0xff] %vm47_vm0, %v157_v19 }
 0x114   :  { %268 = shalt.err (!%p265_p6)
}
 0x115   :  { %s269_s15 = scalar_lea.hbm %s368_s3, 256 }
 0x116   :  { %p270_p7 = scmp.ne.s32.totalorder %s368_s3, %s269_s15  ;;  %p273_p8 = scmp.lt.u32.totalorder %s269_s15, %s368_s3 }
 0x118   :  { %p275_p9 = pnand %p273_p8, %p270_p7 }
 0x11a   :  { %278 = shalt.err (!%p275_p9)
}
 0x11b   :  { %172 = dma.vmem_to_hbm [thread:$0]  %s167_s12, 256, %s368_s3, [#allocation5], %s286_s22, %s286_s22, %s287_s23  }
 0x11c   :  { %283 = dma.done.wait [#allocation5], 256  }
 0x11d   :  { %284 = vsyncadd [#allocation5], 4294967040 }
 0x11e   :  { %176 = vsyncpa [#allocation4], 1 }
 0x11f   :  { %177 = vsyncpa [#allocation7], 1 }
 0x120   :  { %178 = vsyncpa [#allocation5], 1 }

</bundles_post_ra>
